<compile_context>
chip_gen: v7x
topology: tpu7x:2x2x1
jax: 0.10.0
libtpu: 0.0.40
codegen_flags: <defaults>
</compile_context>

<pallas_src>
import jax
import jax.numpy as jnp
from jax.experimental import pallas as pl
from jax.experimental.pallas import tpu as pltpu

_BN_EPS = 1e-5
_LANE = 128
_SUBLANE = 8


def _round_up(x, m):
    return ((x + m - 1) // m) * m


def _cdiv(a, b):
    return -(-a // b)


def _pad2d(a, rows, cols):
    return jnp.pad(a, ((0, rows - a.shape[0]), (0, cols - a.shape[1])))


# ---------------------------------------------------------------------------
# Fused kernel (whole MLP in one body; layer count fixed at trace time)
# ---------------------------------------------------------------------------
def make_fused_mlp_kernel(n_hidden, has_output):
    def kernel(*refs):
        # refs = (x, w0, b0, ..., w_{n-1}, b_{n-1}, [w_out_row, b_out_row], o)
        x_ref = refs[0]
        o_ref = refs[-1]
        h = x_ref[...]                                   # bf16 input tile
        for i in range(n_hidden):
            w = refs[1 + 2 * i][...]                     # bf16 (Kp, Np)
            b = refs[2 + 2 * i][...]                     # f32  (1, Np)
            # Linear + folded BatchNorm(eval) -> MXU in bf16, f32 epilogue.
            # TODO(synk): Dropout(p) is identity in eval mode; no masking applied.
            y = jnp.dot(h.astype(jnp.bfloat16), w,
                        preferred_element_type=jnp.float32)
            h = jnp.maximum(y + b, 0.0)                  # f32 activations
        if has_output:
            w_row = refs[1 + 2 * n_hidden][...]          # f32 (1, Dlast_pad)
            b_row = refs[2 + 2 * n_hidden][...]          # f32 (1, d_out_pad), replicated
            # 1-column projection as VPU multiply + XLU lane reduction instead
            # of a 127/128-wasted MXU matmul; broadcast keeps the store lane-dense.
            s = jnp.sum(h.astype(jnp.float32) * w_row, axis=-1, keepdims=True)
            o_ref[...] = s + b_row
        else:
            o_ref[...] = h.astype(o_ref.dtype)

    return kernel


# ---------------------------------------------------------------------------
# Parameter prep: fold BN into (W, b), zero-pad to lane-dense shapes, bf16 W
# ---------------------------------------------------------------------------
def fold_bn_into_linear(w, b, gamma, beta, mean, var, eps=_BN_EPS):
    # ((x@w + b) - mean) * gamma * rsqrt(var+eps) + beta
    #   == x @ (w*scale) + ((b-mean)*scale + beta)
    scale = gamma * jax.lax.rsqrt(var + eps)             # (1, Dout)
    return w * scale, (b - mean) * scale + beta


def prepare_fused_params(input_dim, hidden_params, out_params):
    dims = [input_dim] + [p["w"].shape[1] for p in hidden_params]
    dims_pad = [_round_up(d, _LANE) for d in dims]
    flat = []
    for i, p in enumerate(hidden_params):
        w, b = fold_bn_into_linear(p["w"], p["b"], p["gamma"], p["beta"],
                                   p["mean"], p["var"])
        flat.append(_pad2d(w, dims_pad[i], dims_pad[i + 1]).astype(jnp.bfloat16))
        flat.append(_pad2d(b, 1, dims_pad[i + 1]).astype(jnp.float32))
    if out_params is not None:
        d_out = out_params["w"].shape[1]                 # == 1
        d_out_pad = _round_up(d_out, _LANE)              # 128 (lane-dense store)
        # Output weight as a row vector for the VPU/XLU reduction path (kept
        # f32: it is tiny and the reduction inputs are f32 activations).
        w_row = _pad2d(out_params["w"].T, 1, dims_pad[-1]).astype(jnp.float32)
        # Bias replicated across all padded output lanes so every lane of the
        # broadcast result is valid; the wrapper slices lane 0.
        b_row = jnp.broadcast_to(
            out_params["b"].reshape(1, 1).astype(jnp.float32), (1, d_out_pad))
        flat.append(w_row)
        flat.append(jnp.asarray(b_row))
        return flat, dims_pad, d_out, d_out_pad
    return flat, dims_pad, dims[-1], dims_pad[-1]


# ---------------------------------------------------------------------------
# Wrapper: single pallas_call, balanced batch-tiled grid
# ---------------------------------------------------------------------------
def mlp_forward_fused(x, hidden_params, out_params, tile_b=256,
                      single_buffer_params=False):
    n_hidden = len(hidden_params)
    has_output = out_params is not None
    flat, dims_pad, d_out, d_out_pad = prepare_fused_params(
        x.shape[1], hidden_params, out_params)

    batch = x.shape[0]
    d0_pad = dims_pad[0]

    # ---- Batch tiling: balanced tiles (padding waste bounded by a few rows)
    #      and >= 2 grid steps whenever the batch allows it, so the "parallel"
    #      batch axis can be sharded across both v7x TensorCores.
    b8 = _round_up(batch, _SUBLANE)
    n_steps = max(_cdiv(b8, tile_b), 2 if b8 >= 2 * _SUBLANE else 1)
    tile_b = _round_up(_cdiv(b8, n_steps), _SUBLANE)
    b_pad = n_steps * tile_b

    x_p = _pad2d(x, b_pad, d0_pad).astype(jnp.bfloat16)

    grid = (n_steps,)
    x_spec = pl.BlockSpec((tile_b, d0_pad), lambda i: (i, 0))
    if single_buffer_params:
        # v7x (64 MiB VMEM): halve the residency of kernel-resident weights.
        param_specs = [pl.BlockSpec(p.shape, lambda i: (0, 0),
                                    pipeline_mode=pl.Buffered(1)) for p in flat]
    else:
        # Constant block index => Pallas does not re-DMA these per grid step.
        param_specs = [pl.BlockSpec(p.shape, lambda i: (0, 0)) for p in flat]
    out_spec = pl.BlockSpec((tile_b, d_out_pad), lambda i: (i, 0))

    # ---- VMEM budget: double-buffered x/out tiles + resident params +
    #      headroom for live f32 activations of the widest layer.
    param_bytes = sum(int(p.size) * p.dtype.itemsize for p in flat)
    x_tile_bytes = 2 * tile_b * d0_pad                       # bf16
    out_tile_bytes = 4 * tile_b * d_out_pad                  # f32
    act_bytes = 4 * tile_b * max(dims_pad + [d_out_pad])     # f32 activations
    needed = (2 * (x_tile_bytes + out_tile_bytes)
              + (1 if single_buffer_params else 2) * param_bytes
              + 4 * act_bytes)
    vmem_limit = int(min(max(2 * needed, 32 * 2**20), 64 * 2**20))

    # ---- Advisory cost estimate (scheduler hint only).
    flops = 0
    for i in range(n_hidden):
        flops += 2 * b_pad * dims_pad[i] * dims_pad[i + 1]
    if has_output:
        flops += 2 * b_pad * dims_pad[-1]                    # VPU mul + reduce
    bytes_accessed = int(x_p.size * x_p.dtype.itemsize + param_bytes
                         + b_pad * d_out_pad * 4)

    out_padded = pl.pallas_call(
        make_fused_mlp_kernel(n_hidden, has_output),
        out_shape=jax.ShapeDtypeStruct((b_pad, d_out_pad), jnp.float32),
        grid=grid,
        in_specs=[x_spec] + param_specs,
        out_specs=out_spec,
        compiler_params=pltpu.CompilerParams(
            dimension_semantics=("parallel",),
            vmem_limit_bytes=vmem_limit),
        cost_estimate=pl.CostEstimate(
            flops=flops, transcendentals=0, bytes_accessed=bytes_accessed),
    )(x_p, *flat)

    return out_padded[:batch, :d_out]


# ---------------------------------------------------------------------------
# Parameter construction (deterministic, PyTorch-Linear-style init; BN stats
# deliberately NON-trivial so the BN-folding path is actually exercised)
# ---------------------------------------------------------------------------
def init_mlp_params(key, input_dim, embed_dims, output_layer=True):
    params = []
    d_in = input_dim
    for d_out in embed_dims:
        key, kw, kb, kg, kbe, km, kv = jax.random.split(key, 7)
        bound = float(1.0 / (d_in ** 0.5))
        w = jax.random.uniform(kw, (d_in, d_out), jnp.float32, -bound, bound)
        b = jax.random.uniform(kb, (1, d_out), jnp.float32, -bound, bound)
        gamma = jax.random.uniform(kg, (1, d_out), jnp.float32, 0.5, 1.5)
        beta = jax.random.uniform(kbe, (1, d_out), jnp.float32, -0.5, 0.5)
        mean = jax.random.uniform(km, (1, d_out), jnp.float32, -0.5, 0.5)
        var = jax.random.uniform(kv, (1, d_out), jnp.float32, 0.5, 1.5)
        params.append(dict(w=w, b=b, gamma=gamma, beta=beta, mean=mean, var=var))
        d_in = d_out
    out_params = None
    if output_layer:
        key, kw, kb = jax.random.split(key, 3)
        bound = float(1.0 / (d_in ** 0.5))
        w = jax.random.uniform(kw, (d_in, 1), jnp.float32, -bound, bound)
        b = jax.random.uniform(kb, (1, 1), jnp.float32, -bound, bound)
        out_params = dict(w=w, b=b)
    return params, out_params


def mlp_reference(x, hidden_params, out_params):
    """Pure-JAX f32 reference (unfolded BN, unpadded) for correctness checking."""
    for p in hidden_params:
        y = x @ p["w"] + p["b"]
        y = (y - p["mean"]) * (p["gamma"] * jax.lax.rsqrt(p["var"] + _BN_EPS)) \
            + p["beta"]
        x = jnp.maximum(y, 0.0)
    if out_params is not None:
        x = x @ out_params["w"] + out_params["b"]
    return x


# ---------------------------------------------------------------------------
if __name__ == "__main__":
    key = jax.random.PRNGKey(0)
    key, kx, kp = jax.random.split(key, 3)

    batch_size = 8
    input_dim = 16
    embed_dims = (32, 16)
    dropout = 0.0  # eval-mode dropout is identity regardless

    x = jax.random.normal(kx, (batch_size, input_dim), jnp.float32)
    hidden_params, out_params = init_mlp_params(kp, input_dim, embed_dims,
                                                output_layer=True)

    out = mlp_forward_fused(x, hidden_params, out_params)
    out = jax.block_until_ready(out)

    ref = mlp_reference(x, hidden_params, out_params)
    assert out.shape == (batch_size, 1), out.shape
    # bf16 MXU inputs with f32 accumulation/epilogue: loosen tolerance a bit.
    assert jnp.allclose(out, ref, atol=3e-2, rtol=3e-2), "mismatch vs reference"

    print("KERNEL_OK")
</pallas_src>

<mosaic_0001>
module attributes {stable_mosaic.version = 11 : i64} {
  func.func @kernel(%arg0: i32, %arg1: memref<8x128xbf16, #tpu.memory_space<vmem>>, %arg2: memref<128x128xbf16, #tpu.memory_space<vmem>>, %arg3: memref<1x128xf32, #tpu.memory_space<vmem>>, %arg4: memref<128x128xbf16, #tpu.memory_space<vmem>>, %arg5: memref<1x128xf32, #tpu.memory_space<vmem>>, %arg6: memref<1x128xf32, #tpu.memory_space<vmem>>, %arg7: memref<1x128xf32, #tpu.memory_space<vmem>>, %arg8: memref<8x128xf32, #tpu.memory_space<vmem>>) attributes {dimension_semantics = [#tpu.dimension_semantics<parallel>], iteration_bounds = array<i64: 1>, scalar_prefetch = 0 : i64, scratch_operands = 0 : i64, tpu.core_type = #tpu.core_type<tc>, window_params = [{transform_indices = @transform_0, window_bounds = array<i64: 8, 128>}, {pipeline_mode = #tpu.pipeline_mode<synchronous>, transform_indices = @transform_1, window_bounds = array<i64: 128, 128>}, {pipeline_mode = #tpu.pipeline_mode<synchronous>, transform_indices = @transform_2, window_bounds = array<i64: 1, 128>}, {pipeline_mode = #tpu.pipeline_mode<synchronous>, transform_indices = @transform_3, window_bounds = array<i64: 128, 128>}, {pipeline_mode = #tpu.pipeline_mode<synchronous>, transform_indices = @transform_4, window_bounds = array<i64: 1, 128>}, {pipeline_mode = #tpu.pipeline_mode<synchronous>, transform_indices = @transform_5, window_bounds = array<i64: 1, 128>}, {pipeline_mode = #tpu.pipeline_mode<synchronous>, transform_indices = @transform_6, window_bounds = array<i64: 1, 128>}, {transform_indices = @transform_7, window_bounds = array<i64: 8, 128>}]} {
    %c0 = arith.constant 0 : index
    %c0_0 = arith.constant 0 : index
    %0 = vector.load %arg1[%c0, %c0_0] : memref<8x128xbf16, #tpu.memory_space<vmem>>, vector<8x128xbf16>
    %c0_1 = arith.constant 0 : index
    %c0_2 = arith.constant 0 : index
    %1 = vector.load %arg2[%c0_1, %c0_2] : memref<128x128xbf16, #tpu.memory_space<vmem>>, vector<128x128xbf16>
    %c0_3 = arith.constant 0 : index
    %c0_4 = arith.constant 0 : index
    %2 = vector.load %arg3[%c0_3, %c0_4] : memref<1x128xf32, #tpu.memory_space<vmem>>, vector<1x128xf32>
    %cst = arith.constant dense<0.000000e+00> : vector<8x128xf32>
    %3 = tpu.matmul %0, %1, %cst {dimension_numbers = #tpu.dot_dimension_numbers<[1], [0], [0], [1], [0, 0, 1, 1], [], []>} : vector<8x128xbf16>, vector<128x128xbf16>, vector<8x128xf32> -> vector<8x128xf32>
    %4 = vector.broadcast %2 : vector<1x128xf32> to vector<8x128xf32>
    %5 = arith.addf %3, %4 : vector<8x128xf32>
    %cst_5 = arith.constant 0.000000e+00 : f32
    %6 = vector.broadcast %cst_5 : f32 to vector<8x128xf32>
    %7 = arith.maximumf %5, %6 : vector<8x128xf32>
    %c0_6 = arith.constant 0 : index
    %c0_7 = arith.constant 0 : index
    %8 = vector.load %arg4[%c0_6, %c0_7] : memref<128x128xbf16, #tpu.memory_space<vmem>>, vector<128x128xbf16>
    %c0_8 = arith.constant 0 : index
    %c0_9 = arith.constant 0 : index
    %9 = vector.load %arg5[%c0_8, %c0_9] : memref<1x128xf32, #tpu.memory_space<vmem>>, vector<1x128xf32>
    %10 = arith.truncf %7 : vector<8x128xf32> to vector<8x128xbf16>
    %cst_10 = arith.constant dense<0.000000e+00> : vector<8x128xf32>
    %11 = tpu.matmul %10, %8, %cst_10 {dimension_numbers = #tpu.dot_dimension_numbers<[1], [0], [0], [1], [0, 0, 1, 1], [], []>} : vector<8x128xbf16>, vector<128x128xbf16>, vector<8x128xf32> -> vector<8x128xf32>
    %12 = vector.broadcast %9 : vector<1x128xf32> to vector<8x128xf32>
    %13 = arith.addf %11, %12 : vector<8x128xf32>
    %cst_11 = arith.constant 0.000000e+00 : f32
    %14 = vector.broadcast %cst_11 : f32 to vector<8x128xf32>
    %15 = arith.maximumf %13, %14 : vector<8x128xf32>
    %c0_12 = arith.constant 0 : index
    %c0_13 = arith.constant 0 : index
    %16 = vector.load %arg6[%c0_12, %c0_13] : memref<1x128xf32, #tpu.memory_space<vmem>>, vector<1x128xf32>
    %c0_14 = arith.constant 0 : index
    %c0_15 = arith.constant 0 : index
    %17 = vector.load %arg7[%c0_14, %c0_15] : memref<1x128xf32, #tpu.memory_space<vmem>>, vector<1x128xf32>
    %18 = vector.broadcast %16 : vector<1x128xf32> to vector<8x128xf32>
    %19 = arith.mulf %15, %18 : vector<8x128xf32>
    %cst_16 = arith.constant dense<0.000000e+00> : vector<8xf32>
    %20 = vector.multi_reduction <add>, %19, %cst_16 [1] : vector<8x128xf32> to vector<8xf32>
    %21 = vector.shape_cast %20 : vector<8xf32> to vector<8x1xf32>
    %22 = vector.broadcast %21 : vector<8x1xf32> to vector<8x128xf32>
    %23 = vector.broadcast %17 : vector<1x128xf32> to vector<8x128xf32>
    %24 = arith.addf %22, %23 : vector<8x128xf32>
    %c0_17 = arith.constant 0 : index
    %c0_18 = arith.constant 0 : index
    %25 = vector.load %arg8[%c0_17, %c0_18] : memref<8x128xf32, #tpu.memory_space<vmem>>, vector<8x128xf32>
    tpu.vector_store %arg8[%c0_17, %c0_18], %24 {strides = array<i32>} : memref<8x128xf32, #tpu.memory_space<vmem>>, vector<8x128xf32>,
    return
  }
  func.func @transform_0(%arg0: i32) -> (i32, i32) {
    %c0_i32 = arith.constant 0 : i32
    %c0_i32_0 = arith.constant 0 : i32
    return %arg0, %c0_i32 : i32, i32
  }
  func.func @transform_1(%arg0: i32) -> (i32, i32) {
    %c0_i32 = arith.constant 0 : i32
    %c0_i32_0 = arith.constant 0 : i32
    %c0_i32_1 = arith.constant 0 : i32
    return %c0_i32, %c0_i32_0 : i32, i32
  }
  func.func @transform_2(%arg0: i32) -> (i32, i32) {
    %c0_i32 = arith.constant 0 : i32
    %c0_i32_0 = arith.constant 0 : i32
    %c0_i32_1 = arith.constant 0 : i32
    return %c0_i32, %c0_i32_0 : i32, i32
  }
  func.func @transform_3(%arg0: i32) -> (i32, i32) {
    %c0_i32 = arith.constant 0 : i32
    %c0_i32_0 = arith.constant 0 : i32
    %c0_i32_1 = arith.constant 0 : i32
    return %c0_i32, %c0_i32_0 : i32, i32
  }
  func.func @transform_4(%arg0: i32) -> (i32, i32) {
    %c0_i32 = arith.constant 0 : i32
    %c0_i32_0 = arith.constant 0 : i32
    %c0_i32_1 = arith.constant 0 : i32
    return %c0_i32, %c0_i32_0 : i32, i32
  }
  func.func @transform_5(%arg0: i32) -> (i32, i32) {
    %c0_i32 = arith.constant 0 : i32
    %c0_i32_0 = arith.constant 0 : i32
    %c0_i32_1 = arith.constant 0 : i32
    return %c0_i32, %c0_i32_0 : i32, i32
  }
  func.func @transform_6(%arg0: i32) -> (i32, i32) {
    %c0_i32 = arith.constant 0 : i32
    %c0_i32_0 = arith.constant 0 : i32
    %c0_i32_1 = arith.constant 0 : i32
    return %c0_i32, %c0_i32_0 : i32, i32
  }
  func.func @transform_7(%arg0: i32) -> (i32, i32) {
    %c0_i32 = arith.constant 0 : i32
    %c0_i32_0 = arith.constant 0 : i32
    return %arg0, %c0_i32 : i32, i32
  }
}

</mosaic_0001>

<bundles_post_ra>
// kernel: tpu_custom_call.1
= control target key start
LH: loop header
LB: loop body
LE: loop exit
PB: predicated region body
PF: predicated region fallthrough
CT: control target
= control target key end

     0   :  { %12 = vsyncpa [#allocation3], 0  ;;  %s638_s0 = inlined_call_operand.hbm [shape: bf16[8,128], index: 0, kind: input, shape index: {}]   ;;  %s639_s1 = inlined_call_operand.hbm [shape: bf16[128,128], index: 1, kind: input, shape index: {}]   ;;  %s640_s2 = inlined_call_operand.vmem [shape: f32[1,128], index: 2, kind: input, shape index: {}]   ;;  %s641_s3 = inlined_call_operand.hbm [shape: bf16[128,128], index: 3, kind: input, shape index: {}]   ;;  %s642_s4 = inlined_call_operand.vmem [shape: f32[1,128], index: 4, kind: input, shape index: {}]   ;;  %s643_s5 = inlined_call_operand.vmem [shape: f32[1,128], index: 5, kind: input, shape index: {}]   ;;  %s644_s6 = inlined_call_operand.vmem [shape: f32[1,128], index: 6, kind: input, shape index: {}]   ;;  %s645_s7 = inlined_call_operand.hbm [shape: f32[8,128], index: 7, kind: output, shape index: {}]  }
   0x1   :  { %13 = vsyncpa [#allocation6], 0 }
   0x2   :  { %14 = vsyncpa [#allocation4], 0  ;;  %s524_s24 = smov [#allocation5]   ;;  %s430_s28 = scalar_lea.hbm %s639_s1, 1024 }
   0x3   :  { %s30_s25 = sshll.u32 %s524_s24, 4  ;;  %p431_p0 = scmp.ne.s32.totalorder %s639_s1, %s430_s28  ;;  %s31_s25 = int_to_ptr.vmem [resolvable:$true] %s30_s25 }
   0x4   :  { %p434_p1 = scmp.lt.u32.totalorder %s430_s28, %s639_s1 }
   0x6   :  { %p436_p2 = pnand %p434_p1, %p431_p0 }
   0x8   :  { %439 = shalt.err (!%p436_p2)
}
   0x9   :  { %s440_s10 = scalar_lea.vmem %s31_s25, 1024  ;;  %p445_p4 = scmp.lt.s32.totalorder %s31_s25, %s31_s25 }
   0xa   :  { %p441_p3 = scmp.ne.s32.totalorder %s31_s25, %s440_s10  ;;  %p446_p5 = scmp.lt.s32.totalorder %s440_s10, %s440_s10 }
   0xc   :  { %p447_p6 = por %p446_p5, %p445_p4 }
   0xe   :  { %p448_p7 = pnand %p447_p6, %p441_p3 }
  0x10   :  { %451 = shalt.err (!%p448_p7)
}
  0x11   :  { %s525_s11 = smov 64   ;;  %s526_s12 = smov 4  }
  0x12   :  { %36 = dma.hbm_to_vmem [thread:$0]  %s639_s1, 1024, %s31_s25, [#allocation6], %s525_s11, %s525_s11, %s526_s12  }
  0x13   :  { %s527_s15 = smov [#allocation2]   ;;  %s528_s17 = smov [#allocation7]  }
  0x14   :  { %s21_s16 = sshll.u32 %s527_s15, 4  ;;  %s44_s18 = sshll.u32 %s528_s17, 4  ;;  %s22_s16 = int_to_ptr.vmem [resolvable:$true] %s21_s16  ;;  %s45_s18 = int_to_ptr.vmem [resolvable:$true] %s44_s18 }
  0x15   :  { %s452_s21 = scalar_lea.hbm %s638_s0, 64 }
  0x16   :  { %p453_p8 = scmp.ne.s32.totalorder %s638_s0, %s452_s21  ;;  %p456_p9 = scmp.lt.u32.totalorder %s452_s21, %s638_s0 }
  0x18   :  { %p458_p10 = pnand %p456_p9, %p453_p8 }
  0x1a   :  { %461 = shalt.err (!%p458_p10)
}
  0x1b   :  { %s462_s1 = scalar_lea.vmem %s22_s16, 64  ;;  %p467_p12 = scmp.lt.s32.totalorder %s22_s16, %s22_s16 }
  0x1c   :  { %p463_p11 = scmp.ne.s32.totalorder %s22_s16, %s462_s1  ;;  %p468_p13 = scmp.lt.s32.totalorder %s462_s1, %s462_s1 }
  0x1e   :  { %p469_p0 = por %p468_p13, %p467_p12 }
  0x20   :  { %p470_p1 = pnand %p469_p0, %p463_p11 }
  0x22   :  { %473 = shalt.err (!%p470_p1)
}
  0x23   :  { %24 = dma.hbm_to_vmem [thread:$0]  %s638_s0, 64, %s22_s16, [#allocation3]  }
  0x24   :  { %s474_s30 = scalar_lea.hbm %s641_s3, 1024 }
  0x25   :  { %p475_p2 = scmp.ne.s32.totalorder %s641_s3, %s474_s30  ;;  %p478_p3 = scmp.lt.u32.totalorder %s474_s30, %s641_s3 }
  0x27   :  { %p480_p4 = pnand %p478_p3, %p475_p2 }
  0x29   :  { %483 = shalt.err (!%p480_p4)
}
  0x2a   :  { %s484_s14 = scalar_lea.vmem %s45_s18, 1024  ;;  %p489_p6 = scmp.lt.s32.totalorder %s45_s18, %s45_s18 }
  0x2b   :  { %p485_p5 = scmp.ne.s32.totalorder %s45_s18, %s484_s14  ;;  %p490_p7 = scmp.lt.s32.totalorder %s484_s14, %s484_s14 }
  0x2d   :  { %p491_p8 = por %p490_p7, %p489_p6 }
  0x2f   :  { %p492_p9 = pnand %p491_p8, %p485_p5 }
  0x31   :  { %495 = shalt.err (!%p492_p9)
}
  0x32   :  { %50 = dma.hbm_to_vmem [thread:$0]  %s641_s3, 1024, %s45_s18, [#allocation6], %s525_s11, %s525_s11, %s526_s12  }
  0x33   :  { %518 = dma.done.wait [#allocation3], 64  }
  0x34   :  { %519 = vsyncadd [#allocation3], 4294967232 }
  0x35   :  { %520 = dma.done.wait [#allocation6], 2048  }
  0x36   :  { %521 = vsyncadd [#allocation6], 4294965248  ;;  %v529_v0 = vmov 0.0   ;;  %vm530_vm0 = vmmov 0   ;;  %v414_v1 = vld [vmem:[#allocation5] sm:$0xff]   ;;  %v415_v2 = vld [vmem:[#allocation5 + $0x8] sm:$0xff]  }
  0x37   :  { %366 = vmatprep.subr.bf16.mxu0 %v529_v0  ;;  %382 = vmatprep.mubr.msk.bf16.mxu0 %vm530_vm0, %v529_v0  ;;  %v416_v3 = vld [vmem:[#allocation5 + $0x10] sm:$0xff]   ;;  %v422_v4 = vld [vmem:[#allocation7] sm:$0xff]   ;;  %v417_v5 = vld [vmem:[#allocation5 + $0x18] sm:$0xff]   ;;  %s531_s20 = smov [#allocation8]  }
  0x38   :  { %386 = vmatprep.subr.bf16.mxu1 %v529_v0  ;;  %402 = vmatprep.mubr.msk.bf16.mxu1 %vm530_vm0, %v529_v0  ;;  %v423_v6 = vld [vmem:[#allocation7 + $0x8] sm:$0xff]   ;;  %v418_v7 = vld [vmem:[#allocation5 + $0x20] sm:$0xff]   ;;  %v424_v8 = vld [vmem:[#allocation7 + $0x10] sm:$0xff]   ;;  %s318_s21 = sshll.u32 %s531_s20, 4  ;;  %s319_s21 = int_to_ptr.vmem [resolvable:$true] %s318_s21 }
  0x39   :  { %367 = vmatpush3.bf16.msra.mxu0 %v414_v1  ;;  %387 = vmatpush3.bf16.msra.mxu1 %v422_v4  ;;  %v419_v9 = vld [vmem:[#allocation5 + $0x28] sm:$0xff]   ;;  %v425_v10 = vld [vmem:[#allocation7 + $0x18] sm:$0xff]   ;;  %v420_v11 = vld [vmem:[#allocation5 + $0x30] sm:$0xff]   ;;  %p501_p11 = scmp.lt.s32.totalorder %s319_s21, %s319_s21 }
  0x3a   :  { %368 = vmatprep.subr.bf16.mxu0 %v529_v0  ;;  %388 = vmatprep.subr.bf16.mxu1 %v529_v0  ;;  %v426_v12 = vld [vmem:[#allocation7 + $0x20] sm:$0xff]   ;;  %v421_v13 = vld [vmem:[#allocation5 + $0x38] sm:$0xff]   ;;  %v427_v14 = vld [vmem:[#allocation7 + $0x28] sm:$0xff]  }
  0x3b   :  { %v67_v15 = vld [vmem:[#allocation2] sm:$0xf]  ;;  %v428_v16 = vld [vmem:[#allocation7 + $0x30] sm:$0xff]  }
  0x3c   :  { %v429_v17 = vld [vmem:[#allocation7 + $0x38] sm:$0xff]  }
  0x3d   :  { %369 = vmatpush3.bf16.msra.mxu0 %v415_v2  ;;  %389 = vmatpush3.bf16.msra.mxu1 %v423_v6  ;;  %v328_v18 = vld [vmem:[%s640_s2] ss:$0 sm:$0xff] }
  0x3e   :  { %370 = vmatprep.subr.bf16.mxu0 %v529_v0  ;;  %390 = vmatprep.subr.bf16.mxu1 %v529_v0  ;;  %v337_v26 = vld [vmem:[%s642_s4] ss:$0 sm:$0xff]  ;;  %s496_s4 = scalar_lea.vmem %s319_s21, 128 }
  0x3f   :  { %v346_v31 = vld [vmem:[%s643_s5] ss:$0 sm:$0xff]  ;;  %p497_p10 = scmp.ne.s32.totalorder %s319_s21, %s496_s4  ;;  %p502_p12 = scmp.lt.s32.totalorder %s496_s4, %s496_s4 }
  0x40   :  { %v347_v35 = vld [vmem:[%s644_s6] ss:$0 sm:$0xff] }
  0x41   :  { %371 = vmatpush3.bf16.msra.mxu0 %v416_v3  ;;  %391 = vmatpush3.bf16.msra.mxu1 %v424_v8  ;;  %p503_p13 = por %p502_p12, %p501_p11 }
  0x42   :  { %372 = vmatprep.subr.bf16.mxu0 %v529_v0  ;;  %392 = vmatprep.subr.bf16.mxu1 %v529_v0 }
  0x43   :  { %p504_p0 = pnand %p503_p13, %p497_p10 }
  0x45   :  { %373 = vmatpush3.bf16.msra.mxu0 %v417_v5  ;;  %393 = vmatpush3.bf16.msra.mxu1 %v425_v10 }
  0x46   :  { %374 = vmatprep.subr.bf16.mxu0 %v529_v0  ;;  %394 = vmatprep.subr.bf16.mxu1 %v529_v0 }
  0x49   :  { %375 = vmatpush3.bf16.msra.mxu0 %v418_v7  ;;  %395 = vmatpush3.bf16.msra.mxu1 %v426_v12 }
  0x4a   :  { %376 = vmatprep.subr.bf16.mxu0 %v529_v0  ;;  %396 = vmatprep.subr.bf16.mxu1 %v529_v0 }
  0x4d   :  { %377 = vmatpush3.bf16.msra.mxu0 %v419_v9  ;;  %397 = vmatpush3.bf16.msra.mxu1 %v427_v14 }
  0x4e   :  { %378 = vmatprep.subr.bf16.mxu0 %v529_v0  ;;  %398 = vmatprep.subr.bf16.mxu1 %v529_v0 }
  0x51   :  { %379 = vmatpush3.bf16.msra.mxu0 %v420_v11  ;;  %399 = vmatpush3.bf16.msra.mxu1 %v428_v16 }
  0x52   :  { %380 = vmatprep.subr.bf16.mxu0 %v529_v0  ;;  %400 = vmatprep.subr.bf16.mxu1 %v529_v0 }
  0x55   :  { %381 = vmatpush3.bf16.msra.mxu0 %v421_v13  ;;  %401 = vmatpush3.bf16.msra.mxu1 %v429_v17 }
  0x58   :  { %383 = vmatmul.mubr.bf16.vlgmr.msra.gmra.mrb[0].mxu0 %v67_v15 }
 0x12b   :  { %v173_v19 = vpop.f32.mrb[0].mxu0 }
 0x12c   :  { %v174_v20 = vadd.f32 %v328_v18, %v173_v19  ;;  %v384_v21 = vpop.f32.mrb[1].mxu0 }
 0x12d   :  { %v176_v22 = vpop.f32.mrb[2].mxu0 }
 0x12e   :  { %v179_v23 = vmax.f32 %v174_v20, 0.0  ;;  %v385_v24 = vpop.f32.mrb[3].mxu0 }
 0x130   :  { %v197_v25 = vpack.c.bf16 %v179_v23, %v179_v23 }
 0x132   :  { %403 = vmatmul.mubr.bf16.vlgmr.msra.gmra.mrb[0].mxu1 %v197_v25 }
 0x205   :  { %v286_v27 = vpop.f32.mrb[0].mxu1 }
 0x206   :  { %v287_v28 = vadd.f32 %v337_v26, %v286_v27  ;;  %v404_v29 = vpop.f32.mrb[1].mxu1 }
 0x207   :  { %v289_v30 = vpop.f32.mrb[2].mxu1 }
 0x208   :  { %v292_v32 = vmax.f32 %v287_v28, 0.0  ;;  %v405_v33 = vpop.f32.mrb[3].mxu1 }
 0x20a   :  { %v301_v34 = vmul.f32 %v346_v31, %v292_v32 }
 0x20c   :  { %302 = vadd.xlane.f32.xlu0 %v301_v34 }
 0x299   :  { %v303_v36 = vpop.xlane.xlu0 %302 }
 0x29a   :  { %v310_v37 = vadd.f32 %v347_v35, %v303_v36 }
 0x29c   :  { %311 = vst [vmem:[#allocation8] sm:$0xff] %v310_v37 }
 0x29d   :  { %507 = shalt.err (!%p504_p0)
}
 0x29e   :  { %s508_s23 = scalar_lea.hbm %s645_s7, 128 }
 0x29f   :  { %p509_p1 = scmp.ne.s32.totalorder %s645_s7, %s508_s23  ;;  %p512_p2 = scmp.lt.u32.totalorder %s508_s23, %s645_s7 }
 0x2a1   :  { %p514_p3 = pnand %p512_p2, %p509_p1 }
 0x2a3   :  { %517 = shalt.err (!%p514_p3)
}
 0x2a4   :  { %321 = dma.vmem_to_hbm [thread:$0]  %s319_s21, 128, %s645_s7, [#allocation4]  }
 0x2a5   :  { %522 = dma.done.wait [#allocation4], 128  }
 0x2a6   :  { %523 = vsyncadd [#allocation4], 4294967168 }
 0x2a7   :  { %325 = vsyncpa [#allocation3], 1 }
 0x2a8   :  { %326 = vsyncpa [#allocation6], 1 }
 0x2a9   :  { %327 = vsyncpa [#allocation4], 1 }

</bundles_post_ra>
